<compile_context>
chip_gen: v5e
topology: v5e:2x2
jax: 0.10.0
libtpu: 0.0.40
codegen_flags: <defaults>
</compile_context>

<pallas_src>
import jax
import jax.numpy as jnp
from jax.experimental import pallas as pl
from jax.experimental.pallas import tpu as pltpu


def _mlp_kernel(x_ref, wgu_ref, wd_ref, o_ref, acc_ref):
    # x_ref  : (tm, H)       token tile (constant along the intermediate axis)
    # wgu_ref: (H, 2*tI)     interleaved [gate_j | up_j] column block (streamed)
    # wd_ref : (tI, H)       down-proj row block (streamed)
    # o_ref  : (tm, H)       output tile
    # acc_ref: (tm, H) f32   accumulator, resident across the intermediate axis
    j = pl.program_id(1)
    tI = wd_ref.shape[0]

    x = x_ref[...]
    # One wide MXU pass over the fused gate|up columns (N = 2*tI), f32 acc.
    gu = jnp.dot(x, wgu_ref[...], preferred_element_type=jnp.float32)
    gate = gu[:, :tI]            # lane-aligned split (tI is a multiple of 128)
    up = gu[:, tI:]
    # SiluAndMul in f32 (VPU + EUP).
    act = (gate * jax.nn.sigmoid(gate)) * up
    # Partial down projection for this intermediate block (MXU).
    partial = jnp.dot(
        act.astype(wd_ref.dtype), wd_ref[...], preferred_element_type=jnp.float32
    )

    @pl.when(j == 0)
    def _():
        acc_ref[...] = partial   # init with first partial: no zero-fill pass

    @pl.when(j != 0)
    def _():
        acc_ref[...] += partial

    @pl.when(j == pl.num_programs(1) - 1)
    def _():
        o_ref[...] = acc_ref[...].astype(o_ref.dtype)


def _round_up(x, m):
    return (x + m - 1) // m * m


def _vmem_capacity_bytes():
    # v5e/v6e: 128 MiB per TensorCore; v7x: 64 MiB. Fall back conservatively.
    try:
        cap = int(pltpu.get_tpu_info().vmem_capacity_bytes)
        if cap > 0:
            return cap
    except Exception:
        pass
    return 64 << 20


def _default_tiles(vmem_cap):
    # Returns (token tile, intermediate tile, weight buffer depth).
    if vmem_cap >= (100 << 20):
        # v5e / v6e (128 MiB VMEM): tm=1024 clears the ~650 FLOP/byte v6e
        # roofline (and v5e's ~240); ~90 MiB bf16 with tI=512 and 3-deep
        # weight buffering.
        return 1024, 512, 3
    # v7x (64 MiB per-TC VMEM) or unknown: tm=512 / tI=512 (~50 MiB bf16)
    # clears the ~320 FLOP/byte roofline and fits the smaller budget.
    return 512, 512, 2


def _vmem_estimate(tm, tI, H, w_itemsize, x_itemsize, w_buffers):
    weights = w_buffers * 3 * H * tI * w_itemsize     # (H,2tI) gate|up + (tI,H) down
    x_buf = 2 * tm * H * x_itemsize
    out_buf = 2 * tm * H * x_itemsize
    acc = tm * H * 4
    return weights + x_buf + out_buf + acc


def _maybe_buffered_spec(block_shape, index_map, buffers):
    if buffers > 2:
        try:
            return pl.BlockSpec(block_shape, index_map, pipeline_mode=pl.Buffered(buffers))
        except TypeError:
            pass  # older jax without pipeline_mode: fall back to default 2-deep
    return pl.BlockSpec(block_shape, index_map)


def baichuan_mlp(x, w_gate_up, w_down, *, tm=None, inter_tile=None):
    """x: [T, H], w_gate_up: [H, 2*I], w_down: [I, H] -> [T, H].

    tm         : token tile. Default picked from VMEM capacity so prefill is
                 MXU-bound: 1024 on 128-MiB parts (v5e/v6e), 512 on v7x.
    inter_tile : intermediate tile target (multiple of 128); default 512 which
                 matches the 256-wide MXU on v6e/v7x. I is zero-padded up to a
                 multiple of it (silu(0)*0 == 0, so padding is exact).
    """
    T, H = x.shape
    H2, two_I = w_gate_up.shape
    I, H3 = w_down.shape
    assert H == H2 == H3 and two_I == 2 * I

    x_itemsize = jnp.dtype(x.dtype).itemsize
    w_itemsize = jnp.dtype(w_gate_up.dtype).itemsize
    sublane = max(8, 32 // x_itemsize)  # 8 for f32, 16 for bf16, 32 for int8

    vmem_cap = _vmem_capacity_bytes()
    tm_default, tI_default, w_buffers = _default_tiles(vmem_cap)
    if tm is None:
        tm = tm_default
    if inter_tile is None:
        inter_tile = tI_default
    tm = _round_up(max(tm, sublane), sublane)

    # Intermediate tile: a multiple of 128; pad I up to a multiple of it.
    tI = min(max(128, (inter_tile // 128) * 128), _round_up(I, 128))
    I_pad = _round_up(I, tI)
    num_j = I_pad // tI

    # Token tile: multiple of the packed-sublane count; pad T to a tile multiple.
    tm_eff = min(tm, _round_up(T, sublane))

    # VMEM budget: clamp to actual capacity (v7x is only 64 MiB per TensorCore).
    budget = vmem_cap - (4 << 20)
    if w_buffers > 2 and num_j < 3:
        w_buffers = 2  # deeper weight buffering is pointless for tiny reductions
    est = _vmem_estimate(tm_eff, tI, H, w_itemsize, x_itemsize, w_buffers)
    if est > budget and w_buffers > 2:
        w_buffers = 2
        est = _vmem_estimate(tm_eff, tI, H, w_itemsize, x_itemsize, w_buffers)
    while est > budget and tm_eff > sublane:
        tm_eff = _round_up(max(sublane, tm_eff // 2), sublane)
        est = _vmem_estimate(tm_eff, tI, H, w_itemsize, x_itemsize, w_buffers)
    vmem_limit = int(min(budget, max(32 << 20, int(est * 1.5) + (4 << 20))))

    T_pad = _round_up(T, tm_eff)
    if T_pad != T:
        x = jnp.pad(x, ((0, T_pad - T), (0, 0)))

    # Interleave gate/up columns so block j is one contiguous (H, 2*tI) slab
    # [gate_j | up_j]: one DMA descriptor + one wide MXU pass per step. In a
    # real deployment this relayout happens once at weight-load time.
    gate_w = w_gate_up[:, :I]
    up_w = w_gate_up[:, I:]
    if I_pad != I:
        gate_w = jnp.pad(gate_w, ((0, 0), (0, I_pad - I)))
        up_w = jnp.pad(up_w, ((0, 0), (0, I_pad - I)))
        w_down = jnp.pad(w_down, ((0, I_pad - I), (0, 0)))
    w_gu = jnp.concatenate(
        [gate_w.reshape(H, num_j, tI), up_w.reshape(H, num_j, tI)], axis=2
    ).reshape(H, num_j * 2 * tI)

    grid = (T_pad // tm_eff, num_j)
    num_i = T_pad // tm_eff

    wgu_spec = _maybe_buffered_spec((H, 2 * tI), lambda i, j: (0, j), w_buffers)
    wd_spec = _maybe_buffered_spec((tI, H), lambda i, j: (j, 0), w_buffers)

    cost = pl.CostEstimate(
        flops=6 * T_pad * H * I_pad,                # gate+up (4*T*H*I) + down (2*T*I*H)
        transcendentals=T_pad * I_pad,              # sigmoid
        # Weights are re-streamed once per token tile (grid i outer, j inner).
        bytes_accessed=num_i * 3 * H * I_pad * w_itemsize + 2 * T_pad * H * x_itemsize,
    )

    # TODO(synk): for decode-shaped calls (single token tile) on v7x, split the
    # intermediate axis across the two TensorCores with per-core partial
    # accumulators; the single "parallel" token program leaves one core idle.
    out = pl.pallas_call(
        _mlp_kernel,
        out_shape=jax.ShapeDtypeStruct((T_pad, H), x.dtype),
        grid_spec=pltpu.PrefetchScalarGridSpec(
            num_scalar_prefetch=0,
            grid=grid,
            in_specs=[
                pl.BlockSpec((tm_eff, H), lambda i, j: (i, 0)),  # token tile
                wgu_spec,                                        # gate|up columns
                wd_spec,                                         # down rows
            ],
            out_specs=pl.BlockSpec((tm_eff, H), lambda i, j: (i, 0)),
            scratch_shapes=[pltpu.VMEM((tm_eff, H), jnp.float32)],
        ),
        compiler_params=pltpu.CompilerParams(
            dimension_semantics=("parallel", "arbitrary"),
            vmem_limit_bytes=vmem_limit,
        ),
        cost_estimate=cost,
    )(x, w_gu, w_down)

    return out[:T]


def baichuan_mlp_ref(x, w_gate_up, w_down):
    gate_up = x @ w_gate_up
    inter = w_down.shape[0]
    gate, up = gate_up[:, :inter], gate_up[:, inter:]
    return (jax.nn.silu(gate) * up) @ w_down


# TODO(synk): attention (paged KV cache), rotary/ALiBi position embedding,
# RMSNorm, vocab embedding and LM head / logits of BaiChuanBaseForCausalLM are
# not translated here; only the BaiChuanMLP block is a fused Pallas kernel.


if __name__ == "__main__":
    key = jax.random.PRNGKey(0)

    def run_case(T, H, I, **kw):
        kx, kgu, kd = jax.random.split(jax.random.fold_in(key, T * 7919 + H), 3)
        x = jax.random.normal(kx, (T, H), dtype=jnp.float32)
        w_gate_up = jax.random.normal(kgu, (H, 2 * I), dtype=jnp.float32) * (1.0 / H ** 0.5)
        w_down = jax.random.normal(kd, (I, H), dtype=jnp.float32) * (1.0 / I ** 0.5)
        out = jax.block_until_ready(baichuan_mlp(x, w_gate_up, w_down, **kw))
        ref = baichuan_mlp_ref(x, w_gate_up, w_down)
        assert out.shape == (T, H)
        assert jnp.allclose(out, ref, atol=1e-3, rtol=1e-3), (
            f"mismatch T={T} H={H} I={I}: max err "
            f"{float(jnp.max(jnp.abs(out - ref)))}"
        )

    # Small shapes consistent with the module: 8 tokens, hidden=32, intermediate=64.
    run_case(8, 32, 64)
    # Exercise multi-tile accumulation plus token/intermediate zero-padding
    # (T=40 -> 48, I=320 -> 384, grid (3, 3)).
    run_case(40, 128, 320, tm=16, inter_tile=128)

    print("KERNEL_OK")
</pallas_src>

<mosaic_0001>
module attributes {stable_mosaic.version = 11 : i64} {
  func.func @_mlp_kernel(%arg0: i32, %arg1: i32, %arg2: memref<8x32xf32, #tpu.memory_space<vmem>>, %arg3: memref<32x256xf32, #tpu.memory_space<vmem>>, %arg4: memref<128x32xf32, #tpu.memory_space<vmem>>, %arg5: memref<8x32xf32, #tpu.memory_space<vmem>>, %arg6: memref<8x32xf32, #tpu.memory_space<vmem>>) attributes {dimension_semantics = [#tpu.dimension_semantics<parallel>, #tpu.dimension_semantics<arbitrary>], iteration_bounds = array<i64: 1, 1>, scalar_prefetch = 0 : i64, scratch_operands = 1 : i64, tpu.core_type = #tpu.core_type<tc>, window_params = [{transform_indices = @transform_0, window_bounds = array<i64: 8, 32>}, {transform_indices = @transform_1, window_bounds = array<i64: 32, 256>}, {transform_indices = @transform_2, window_bounds = array<i64: 128, 32>}, {transform_indices = @transform_3, window_bounds = array<i64: 8, 32>}]} {
    %c0 = arith.constant 0 : index
    %c0_0 = arith.constant 0 : index
    %0 = vector.load %arg2[%c0, %c0_0] : memref<8x32xf32, #tpu.memory_space<vmem>>, vector<8x32xf32>
    %c0_1 = arith.constant 0 : index
    %c0_2 = arith.constant 0 : index
    %1 = vector.load %arg3[%c0_1, %c0_2] : memref<32x256xf32, #tpu.memory_space<vmem>>, vector<32x256xf32>
    %cst = arith.constant dense<0.000000e+00> : vector<8x256xf32>
    %2 = tpu.matmul %0, %1, %cst {dimension_numbers = #tpu.dot_dimension_numbers<[1], [0], [0], [1], [0, 0, 1, 1], [], []>} : vector<8x32xf32>, vector<32x256xf32>, vector<8x256xf32> -> vector<8x256xf32>
    %3 = vector.extract_strided_slice %2 {offsets = [0, 0], sizes = [8, 128], strides = [1, 1]} : vector<8x256xf32> to vector<8x128xf32>
    %4 = vector.extract_strided_slice %2 {offsets = [0, 128], sizes = [8, 128], strides = [1, 1]} : vector<8x256xf32> to vector<8x128xf32>
    %5 = arith.negf %3 : vector<8x128xf32>
    %6 = math.exp %5 : vector<8x128xf32>
    %cst_3 = arith.constant 1.000000e+00 : f32
    %7 = vector.broadcast %cst_3 : f32 to vector<8x128xf32>
    %8 = arith.addf %7, %6 : vector<8x128xf32>
    %9 = arith.divf %7, %8 : vector<8x128xf32>
    %10 = arith.mulf %3, %9 : vector<8x128xf32>
    %11 = arith.mulf %10, %4 : vector<8x128xf32>
    %c0_4 = arith.constant 0 : index
    %c0_5 = arith.constant 0 : index
    %12 = vector.load %arg4[%c0_4, %c0_5] : memref<128x32xf32, #tpu.memory_space<vmem>>, vector<128x32xf32>
    %cst_6 = arith.constant dense<0.000000e+00> : vector<8x32xf32>
    %13 = tpu.matmul %11, %12, %cst_6 {dimension_numbers = #tpu.dot_dimension_numbers<[1], [0], [0], [1], [0, 0, 1, 1], [], []>} : vector<8x128xf32>, vector<128x32xf32>, vector<8x32xf32> -> vector<8x32xf32>
    %c0_i32 = arith.constant 0 : i32
    %14 = arith.cmpi eq, %arg1, %c0_i32 : i32
    %15 = arith.extui %14 : i1 to i32
    %c0_i32_7 = arith.constant 0 : i32
    %16 = arith.cmpi ne, %15, %c0_i32_7 : i32
    scf.if %16 {
      %c0_12 = arith.constant 0 : index
      %c0_13 = arith.constant 0 : index
      %23 = vector.load %arg6[%c0_12, %c0_13] : memref<8x32xf32, #tpu.memory_space<vmem>>, vector<8x32xf32>
      tpu.vector_store %arg6[%c0_12, %c0_13], %13 {strides = array<i32>} : memref<8x32xf32, #tpu.memory_space<vmem>>, vector<8x32xf32>,
    } else {
    }
    %c0_i32_8 = arith.constant 0 : i32
    %17 = arith.cmpi ne, %arg1, %c0_i32_8 : i32
    %18 = arith.extui %17 : i1 to i32
    %c0_i32_9 = arith.constant 0 : i32
    %19 = arith.cmpi ne, %18, %c0_i32_9 : i32
    scf.if %19 {
      %c0_12 = arith.constant 0 : index
      %c0_13 = arith.constant 0 : index
      %23 = vector.load %arg6[%c0_12, %c0_13] : memref<8x32xf32, #tpu.memory_space<vmem>>, vector<8x32xf32>
      %24 = arith.addf %23, %13 : vector<8x32xf32>
      %c0_14 = arith.constant 0 : index
      %c0_15 = arith.constant 0 : index
      %25 = vector.load %arg6[%c0_14, %c0_15] : memref<8x32xf32, #tpu.memory_space<vmem>>, vector<8x32xf32>
      tpu.vector_store %arg6[%c0_14, %c0_15], %24 {strides = array<i32>} : memref<8x32xf32, #tpu.memory_space<vmem>>, vector<8x32xf32>,
    } else {
    }
    %c0_i32_10 = arith.constant 0 : i32
    %20 = arith.cmpi eq, %arg1, %c0_i32_10 : i32
    %21 = arith.extui %20 : i1 to i32
    %c0_i32_11 = arith.constant 0 : i32
    %22 = arith.cmpi ne, %21, %c0_i32_11 : i32
    scf.if %22 {
      %c0_12 = arith.constant 0 : index
      %c0_13 = arith.constant 0 : index
      %23 = vector.load %arg6[%c0_12, %c0_13] : memref<8x32xf32, #tpu.memory_space<vmem>>, vector<8x32xf32>
      %c0_14 = arith.constant 0 : index
      %c0_15 = arith.constant 0 : index
      %24 = vector.load %arg5[%c0_14, %c0_15] : memref<8x32xf32, #tpu.memory_space<vmem>>, vector<8x32xf32>
      tpu.vector_store %arg5[%c0_14, %c0_15], %23 {strides = array<i32>} : memref<8x32xf32, #tpu.memory_space<vmem>>, vector<8x32xf32>,
    } else {
    }
    return
  }
  func.func @transform_0(%arg0: i32, %arg1: i32) -> (i32, i32) {
    %c0_i32 = arith.constant 0 : i32
    %c0_i32_0 = arith.constant 0 : i32
    return %arg0, %c0_i32 : i32, i32
  }
  func.func @transform_1(%arg0: i32, %arg1: i32) -> (i32, i32) {
    %c0_i32 = arith.constant 0 : i32
    %c0_i32_0 = arith.constant 0 : i32
    return %c0_i32, %arg1 : i32, i32
  }
  func.func @transform_2(%arg0: i32, %arg1: i32) -> (i32, i32) {
    %c0_i32 = arith.constant 0 : i32
    %c0_i32_0 = arith.constant 0 : i32
    return %arg1, %c0_i32 : i32, i32
  }
  func.func @transform_3(%arg0: i32, %arg1: i32) -> (i32, i32) {
    %c0_i32 = arith.constant 0 : i32
    %c0_i32_0 = arith.constant 0 : i32
    return %arg0, %c0_i32 : i32, i32
  }
}

</mosaic_0001>

<bundles_post_ra>
// kernel: tpu_custom_call.1
= control target key start
LH: loop header
LB: loop body
LE: loop exit
PB: predicated region body
PF: predicated region fallthrough
CT: control target
= control target key end

     0   :  { %s295_s0 = inlined_call_operand.vmem [shape: f32[8,32], index: 0, kind: input, shape index: {}]   ;;  %s296_s1 = inlined_call_operand.vmem [shape: f32[32,256], index: 1, kind: input, shape index: {}]   ;;  %s297_s2 = inlined_call_operand.vmem [shape: f32[128,32], index: 2, kind: input, shape index: {}]   ;;  %s298_s3 = inlined_call_operand.hbm [shape: f32[8,32], index: 3, kind: output, shape index: {}]  }
   0x1   :  { %v22_v0 = vld [vmem:[%s296_s1 + $0x30] sm:$0xff]  ;;  %v20_v1 = vld [vmem:[%s296_s1 + $0x20] sm:$0xff]  ;;  %v23_v2 = vld [vmem:[%s296_s1 + $0x38] sm:$0xff] }
   0x2   :  { %40 = vmatpush.msra.mxu0 %v22_v0  ;;  %v18_v3 = vld [vmem:[%s296_s1 + $0x10] sm:$0xff]  ;;  %60 = vmatpush.msra.mxu1 %v23_v2  ;;  %v21_v4 = vld [vmem:[%s296_s1 + $0x28] sm:$0xff]  ;;  %v19_v5 = vld [vmem:[%s296_s1 + $0x18] sm:$0xff] }
   0x4   :  { %41 = vmatpush.msra.mxu0 %v20_v1 }
   0x5   :  { %8 = vsyncpa [#allocation4], 0  ;;  %v16_v6 = vld [vmem:[%s296_s1] sm:$0xff]  ;;  %61 = vmatpush.msra.mxu1 %v21_v4  ;;  %vm24_vm0 = vcmask 261120   ;;  %v17_v8 = vld [vmem:[%s296_s1 + $0x8] sm:$0xff]  ;;  %s149_s1 = sshll.u32 %s298_s3, 4  ;;  %s150_s1 = int_to_ptr.hbm [resolvable:$true] %s149_s1 }
   0x6   :  { %42 = vmatpush.msra.mxu0 %v18_v3  ;;  %v15_v7 = vld [vmem:[%s295_s0] sm:$0xff]  ;;  %v104_v9 = vld [vmem:[%s297_s2 + $0x78] sm:$0xff]  ;;  %v103_v10 = vld [vmem:[%s297_s2 + $0x70] sm:$0xff] }
   0x7   :  { %62 = vmatpush.msra.mxu1 %v19_v5  ;;  %105 = vmatpush.msra.mxu2 %v104_v9  ;;  %v102_v11 = vld [vmem:[%s297_s2 + $0x68] sm:$0xff]  ;;  %v101_v12 = vld [vmem:[%s297_s2 + $0x60] sm:$0xff]  ;;  %v100_v13 = vld [vmem:[%s297_s2 + $0x58] sm:$0xff] }
   0x8   :  { %43 = vmatpush.msra.mxu0 %v16_v6  ;;  %v99_v14 = vld [vmem:[%s297_s2 + $0x50] sm:$0xff]  ;;  %v98_v15 = vld [vmem:[%s297_s2 + $0x48] sm:$0xff]  ;;  %v97_v16 = vld [vmem:[%s297_s2 + $0x40] sm:$0xff] }
   0x9   :  { %158 = vmatmul.msk.f32.vlgmr.msra.gmra.mxu0 %vm24_vm0, %v15_v7  ;;  %63 = vmatpush.msra.mxu1 %v17_v8  ;;  %v96_v17 = vld [vmem:[%s297_s2 + $0x38] sm:$0xff]  ;;  %v95_v18 = vld [vmem:[%s297_s2 + $0x30] sm:$0xff]  ;;  %v94_v19 = vld [vmem:[%s297_s2 + $0x28] sm:$0xff] }
   0xa   :  { %159 = vmatmul.msk.f32.vlgmr.msra.gmra.mxu1 %vm24_vm0, %v15_v7  ;;  %106 = vmatpush.msra.mxu2 %v103_v10  ;;  %v93_v20 = vld [vmem:[%s297_s2 + $0x20] sm:$0xff]  ;;  %v92_v21 = vld [vmem:[%s297_s2 + $0x18] sm:$0xff]  ;;  %v91_v22 = vld [vmem:[%s297_s2 + $0x10] sm:$0xff] }
   0xb   :  { %v90_v23 = vld [vmem:[%s297_s2 + $0x8] sm:$0xff]  ;;  %v89_v24 = vld [vmem:[%s297_s2] sm:$0xff]  ;;  %s192_s2 = smov [#allocation3]  }
   0xc   :  { %107 = vmatpush.msra.mxu2 %v102_v11  ;;  %s147_s6 = sshll.u32 %s192_s2, 4  ;;  %s148_s6 = int_to_ptr.vmem [resolvable:$true] %s147_s6 }
   0xe   :  { %108 = vmatpush.msra.mxu2 %v101_v12 }
  0x10   :  { %109 = vmatpush.msra.mxu2 %v100_v13 }
  0x12   :  { %110 = vmatpush.msra.mxu2 %v99_v14 }
  0x14   :  { %111 = vmatpush.msra.mxu2 %v98_v15 }
  0x16   :  { %112 = vmatpush.msra.mxu2 %v97_v16 }
  0x18   :  { %113 = vmatpush.msra.mxu2 %v96_v17 }
  0x1a   :  { %114 = vmatpush.msra.mxu2 %v95_v18 }
  0x1c   :  { %115 = vmatpush.msra.mxu2 %v94_v19 }
  0x1e   :  { %116 = vmatpush.msra.mxu2 %v93_v20 }
  0x20   :  { %117 = vmatpush.msra.mxu2 %v92_v21 }
  0x22   :  { %118 = vmatpush.msra.mxu2 %v91_v22 }
  0x24   :  { %119 = vmatpush.msra.mxu2 %v90_v23 }
  0x26   :  { %120 = vmatpush.msra.mxu2 %v89_v24 }
  0x86   :  { %v45_v25 = vpop.f32.mrf.mxu0 }
  0x87   :  { %v160_v26 = vmul.f32 -1.442695, %v45_v25  ;;  %v65_v39 = vpop.f32.mrf.mxu1 }
  0x89   :  { %162 = vpow2.f32 %v160_v26 }
  0x8f   :  { %v163_v27 = vpop.eup %162 }
  0x90   :  { %v71_v28 = vadd.f32 1.0, %v163_v27 }
  0x92   :  { %164 = vrcp.f32 %v71_v28  ;;  %v83_v32 = vand.u32 2147483648, %v71_v28  ;;  %v81_v34 = vand.u32 2147483647, %v71_v28  ;;  %vm77_vm2 = vweird.f32 %v71_v28 }
  0x94   :  { %v84_v36 = vor.u32 1.1754944e-38, %v83_v32  ;;  %vm82_vm4 = vcmp.eq.f32.partialorder %v81_v34, 8.507059e+37 }
  0x98   :  { %v165_v29 = vpop.eup %164 }
  0x99   :  { %v73_v30 = vmul.f32 %v165_v29, %v71_v28  ;;  %vm78_vm1 = vweird.f32 %v165_v29 }
  0x9a   :  { %vm79_vm3 = vmor %vm77_vm2, %vm78_vm1 }
  0x9b   :  { %v74_v31 = vsub.f32 1.0, %v73_v30 }
  0x9d   :  { %v75_v33 = vmul.f32 %v165_v29, %v74_v31 }
  0x9f   :  { %v76_v35 = vadd.f32 %v165_v29, %v75_v33 }
  0xa1   :  { %v80_v37 = vsel %vm79_vm3, %v165_v29, %v76_v35 }
  0xa2   :  { %v85_v38 = vsel %vm82_vm4, %v84_v36, %v80_v37 }
  0xa3   :  { %v87_v40 = vmul.f32 %v85_v38, %v45_v25 }
  0xa5   :  { %v88_v41 = vmul.f32 %v87_v40, %v65_v39 }
  0xa7   :  { %121 = vmatmul.f32.vlgmr.msra.gmra.mxu2 %v88_v41 }
 0x12a   :  { %v122_v42 = vpop.f32.mrf.mxu2 }
 0x12b   :  { %129 = vst.msk [vmem:[#allocation2] sm:$0xff] %vm24_vm0, %v122_v42 }
 0x132   :  { %v140_v43 = vld [vmem:[#allocation2] sm:$0xff] }
 0x133   :  { %141 = vst.msk [vmem:[#allocation3] sm:$0xff] %vm24_vm0, %v140_v43 }
 0x134   :  { %152 = dma.vmem_to_hbm [thread:$0]  %s148_s6, 128, %s150_s1, [#allocation4]  }
 0x135   :  { %190 = dma.done.wait [#allocation4], 128  }
 0x136   :  { %191 = vsyncadd [#allocation4], 4294967168 }
 0x137   :  { %157 = vsyncpa [#allocation4], 1 }

</bundles_post_ra>
